<compile_context>
chip_gen: v6e
topology: v6e:2x2x1
jax: 0.10.0
libtpu: 0.0.40
codegen_flags: <defaults>
</compile_context>

<pallas_src>
import functools

import jax
import jax.numpy as jnp
from jax.experimental import pallas as pl
from jax.experimental.pallas import tpu as pltpu


# ---------------------------------------------------------------------------
# Pass 1: global average pool over HW (reduction grid axis) + fc1/ReLU +
#         fc2/Sigmoid -> per-(image, channel) scale of shape (N, C, 1), f32.
# ---------------------------------------------------------------------------
def _se_pool_scale_kernel(x_ref, w1_ref, b1_ref, w2_ref, b2_ref,
                          scale_ref, acc_ref, *, inv_hw):
    k = pl.program_id(1)

    @pl.when(k == 0)
    def _init():
        acc_ref[...] = jnp.zeros_like(acc_ref)

    # Partial sum over this HW tile: cross-lane reduction accumulated in f32
    # without materializing an f32 copy of the whole block.
    acc_ref[...] += jnp.sum(x_ref[0], axis=-1, keepdims=True,
                            dtype=jnp.float32)

    @pl.when(k == pl.num_programs(1) - 1)
    def _finalize():
        pooled = acc_ref[...] * inv_hw                            # (C, 1)
        # fc1 (1x1 conv == dense) + ReLU.
        h = jnp.dot(w1_ref[...], pooled,
                    preferred_element_type=jnp.float32) + b1_ref[...]
        h = jnp.maximum(h, 0.0)                                   # (S, 1)
        # fc2 (1x1 conv == dense) + Sigmoid.
        sc = jnp.dot(w2_ref[...], h,
                     preferred_element_type=jnp.float32) + b2_ref[...]
        scale_ref[0] = jax.nn.sigmoid(sc)                         # (C, 1)


# ---------------------------------------------------------------------------
# Pass 2: apply the per-channel scale.  Fully parallel over (N, HW tiles);
#         per-sublane broadcast multiply in the input dtype, lane-dense stores.
# ---------------------------------------------------------------------------
def _se_apply_kernel(scale_ref, x_ref, o_ref):
    sc = scale_ref[0].astype(o_ref.dtype)                         # (C, 1)
    o_ref[0] = sc * x_ref[0]                                      # (C, THW)


def _choose_hw_tiling(hw, c, itemsize, max_tile_bytes=4 << 20):
    """Return (thw, hw_padded): thw divides hw_padded; thw % 128 == 0 or thw == hw."""
    best = None
    for t in range(128, hw + 1, 128):
        if hw % t == 0 and c * t * itemsize <= max_tile_bytes:
            best = t
    if best is not None:
        return best, hw
    if c * hw * itemsize <= max_tile_bytes:
        return hw, hw                          # small map: one whole-HW tile
    t = max(128, (max_tile_bytes // (c * itemsize)) // 128 * 128)
    return t, pl.cdiv(hw, t) * t               # zero-pad HW (safe for sum & apply)


def squeeze_excitation_pallas(x_nchw, w1, b1, w2, b2):
    """x_nchw: (N, C, H, W); w1: (S, C); b1: (S,); w2: (C, S); b2: (C,)."""
    N, C, H, W = x_nchw.shape
    S = w1.shape[0]
    HW = H * W
    itemsize = jnp.dtype(x_nchw.dtype).itemsize

    # Native layout: NCHW viewed as (N, C, HW) -- free reshape, no transpose.
    x = x_nchw.reshape(N, C, HW)

    thw, HW_p = _choose_hw_tiling(HW, C, itemsize)
    if HW_p != HW:
        x = jnp.pad(x, ((0, 0), (0, 0), (0, HW_p - HW)))
    K = HW_p // thw

    # Tiny parameter prep (constant-folded / hoisted under jit; no transposes
    # needed in this layout -- PyTorch's (S, C) / (C, S) are used directly).
    w1c = jnp.asarray(w1, jnp.float32)                  # (S, C)
    w2c = jnp.asarray(w2, jnp.float32)                  # (C, S)
    b1c = jnp.asarray(b1, jnp.float32).reshape(S, 1)    # (S, 1)
    b2c = jnp.asarray(b2, jnp.float32).reshape(C, 1)    # (C, 1)

    block_bytes = C * thw * itemsize
    vmem_limit = int(min(64 << 20, max(16 << 20, 10 * block_bytes)))

    # Pass 1: pooled mean + FCs -> scale (N, C, 1), f32.
    scale = pl.pallas_call(
        functools.partial(_se_pool_scale_kernel, inv_hw=1.0 / HW),
        out_shape=jax.ShapeDtypeStruct((N, C, 1), jnp.float32),
        grid_spec=pltpu.PrefetchScalarGridSpec(
            num_scalar_prefetch=0,
            grid=(N, K),
            in_specs=[
                pl.BlockSpec((1, C, thw), lambda n, k: (n, 0, k)),
                pl.BlockSpec((S, C), lambda n, k: (0, 0)),
                pl.BlockSpec((S, 1), lambda n, k: (0, 0)),
                pl.BlockSpec((C, S), lambda n, k: (0, 0)),
                pl.BlockSpec((C, 1), lambda n, k: (0, 0)),
            ],
            out_specs=pl.BlockSpec((1, C, 1), lambda n, k: (n, 0, 0)),
            scratch_shapes=[pltpu.VMEM((C, 1), jnp.float32)],
        ),
        compiler_params=pltpu.CompilerParams(
            dimension_semantics=("parallel", "arbitrary"),
            vmem_limit_bytes=vmem_limit),
    )(x, w1c, b1c, w2c, b2c)

    # Pass 2: out = scale * x, HW-tiled and fully parallel.
    out = pl.pallas_call(
        _se_apply_kernel,
        out_shape=jax.ShapeDtypeStruct((N, C, HW_p), x.dtype),
        grid_spec=pltpu.PrefetchScalarGridSpec(
            num_scalar_prefetch=0,
            grid=(N, K),
            in_specs=[
                pl.BlockSpec((1, C, 1), lambda n, k: (n, 0, 0)),
                pl.BlockSpec((1, C, thw), lambda n, k: (n, 0, k)),
            ],
            out_specs=pl.BlockSpec((1, C, thw), lambda n, k: (n, 0, k)),
        ),
        compiler_params=pltpu.CompilerParams(
            dimension_semantics=("parallel", "parallel"),
            vmem_limit_bytes=vmem_limit),
    )(scale, x)

    if HW_p != HW:
        out = out[:, :, :HW]
    return out.reshape(N, C, H, W)


def squeeze_excitation_ref(x_nchw, w1, b1, w2, b2):
    """Pure-JAX reference mirroring the PyTorch SqueezeExcitation forward."""
    pooled = jnp.mean(x_nchw, axis=(2, 3))                  # (N, C)
    h = jnp.maximum(pooled @ w1.T + b1, 0.0)                # (N, S)
    sc = jax.nn.sigmoid(h @ w2.T + b2)                      # (N, C)
    return sc[:, :, None, None] * x_nchw


if __name__ == "__main__":
    # Small deterministic setup: batch=2, input_channels=4, squeeze_channels=2,
    # spatial 16x16.
    N, C, S, H, W = 2, 4, 2, 16, 16

    key = jax.random.PRNGKey(0)
    kx, k1, kb1, k2, kb2 = jax.random.split(key, 5)

    x = jax.random.normal(kx, (N, C, H, W), dtype=jnp.float32)
    # Conv2d(C, S, 1) weight is (S, C, 1, 1) -> squeeze to (S, C); likewise fc2.
    w1 = 0.5 * jax.random.normal(k1, (S, C), dtype=jnp.float32)
    b1 = 0.1 * jax.random.normal(kb1, (S,), dtype=jnp.float32)
    w2 = 0.5 * jax.random.normal(k2, (C, S), dtype=jnp.float32)
    b2 = 0.1 * jax.random.normal(kb2, (C,), dtype=jnp.float32)

    out = squeeze_excitation_pallas(x, w1, b1, w2, b2)
    out = jax.block_until_ready(out)

    ref = squeeze_excitation_ref(x, w1, b1, w2, b2)
    assert out.shape == (N, C, H, W)
    assert jnp.allclose(out, ref, atol=1e-5, rtol=1e-5), "mismatch vs reference"

    print("KERNEL_OK")
</pallas_src>

<mosaic_0001>
module attributes {stable_mosaic.version = 11 : i64} {
  func.func @_se_pool_scale_kernel(%arg0: i32, %arg1: i32, %arg2: memref<1x4x256xf32, #tpu.memory_space<vmem>>, %arg3: memref<2x4xf32, #tpu.memory_space<vmem>>, %arg4: memref<2x1xf32, #tpu.memory_space<vmem>>, %arg5: memref<4x2xf32, #tpu.memory_space<vmem>>, %arg6: memref<4x1xf32, #tpu.memory_space<vmem>>, %arg7: memref<1x4x1xf32, #tpu.memory_space<vmem>>, %arg8: memref<4x1xf32, #tpu.memory_space<vmem>>) attributes {dimension_semantics = [#tpu.dimension_semantics<parallel>, #tpu.dimension_semantics<arbitrary>], iteration_bounds = array<i64: 2, 1>, scalar_prefetch = 0 : i64, scratch_operands = 1 : i64, tpu.core_type = #tpu.core_type<tc>, window_params = [{transform_indices = @transform_0, window_bounds = array<i64: 1, 4, 256>}, {pipeline_mode = #tpu.pipeline_mode<synchronous>, transform_indices = @transform_1, window_bounds = array<i64: 2, 4>}, {pipeline_mode = #tpu.pipeline_mode<synchronous>, transform_indices = @transform_2, window_bounds = array<i64: 2, 1>}, {pipeline_mode = #tpu.pipeline_mode<synchronous>, transform_indices = @transform_3, window_bounds = array<i64: 4, 2>}, {pipeline_mode = #tpu.pipeline_mode<synchronous>, transform_indices = @transform_4, window_bounds = array<i64: 4, 1>}, {transform_indices = @transform_5, window_bounds = array<i64: 1, 4, 1>}]} {
    %c0_i32 = arith.constant 0 : i32
    %0 = arith.cmpi eq, %arg1, %c0_i32 : i32
    %1 = arith.extui %0 : i1 to i32
    %c0_i32_0 = arith.constant 0 : i32
    %2 = arith.cmpi ne, %1, %c0_i32_0 : i32
    scf.if %2 {
      %cst_9 = arith.constant 0.000000e+00 : f32
      %13 = vector.broadcast %cst_9 : f32 to vector<4x1xf32>
      %c0_10 = arith.constant 0 : index
      %c0_11 = arith.constant 0 : index
      %14 = vector.load %arg8[%c0_10, %c0_11] : memref<4x1xf32, #tpu.memory_space<vmem>>, vector<4x1xf32>
      tpu.vector_store %arg8[%c0_10, %c0_11], %13 {strides = array<i32>} : memref<4x1xf32, #tpu.memory_space<vmem>>, vector<4x1xf32>,
    } else {
    }
    %c0 = arith.constant 0 : index
    %c0_1 = arith.constant 0 : index
    %3 = vector.load %arg8[%c0, %c0_1] : memref<4x1xf32, #tpu.memory_space<vmem>>, vector<4x1xf32>
    %c0_2 = arith.constant 0 : index
    %c0_3 = arith.constant 0 : index
    %c0_4 = arith.constant 0 : index
    %4 = vector.load %arg2[%c0_2, %c0_3, %c0_4] : memref<1x4x256xf32, #tpu.memory_space<vmem>>, vector<1x4x256xf32>
    %5 = vector.shape_cast %4 : vector<1x4x256xf32> to vector<4x256xf32>
    %cst = arith.constant dense<0.000000e+00> : vector<4xf32>
    %6 = vector.multi_reduction <add>, %5, %cst [1] : vector<4x256xf32> to vector<4xf32>
    %7 = vector.shape_cast %6 : vector<4xf32> to vector<4x1xf32>
    %8 = arith.addf %3, %7 : vector<4x1xf32>
    %c0_5 = arith.constant 0 : index
    %c0_6 = arith.constant 0 : index
    %9 = vector.load %arg8[%c0_5, %c0_6] : memref<4x1xf32, #tpu.memory_space<vmem>>, vector<4x1xf32>
    tpu.vector_store %arg8[%c0_5, %c0_6], %8 {strides = array<i32>} : memref<4x1xf32, #tpu.memory_space<vmem>>, vector<4x1xf32>,
    %c0_i32_7 = arith.constant 0 : i32
    %10 = arith.cmpi eq, %arg1, %c0_i32_7 : i32
    %11 = arith.extui %10 : i1 to i32
    %c0_i32_8 = arith.constant 0 : i32
    %12 = arith.cmpi ne, %11, %c0_i32_8 : i32
    scf.if %12 {
      %c0_9 = arith.constant 0 : index
      %c0_10 = arith.constant 0 : index
      %13 = vector.load %arg8[%c0_9, %c0_10] : memref<4x1xf32, #tpu.memory_space<vmem>>, vector<4x1xf32>
      %cst_11 = arith.constant 3.906250e-03 : f32
      %14 = vector.broadcast %cst_11 : f32 to vector<4x1xf32>
      %15 = arith.mulf %13, %14 : vector<4x1xf32>
      %c0_12 = arith.constant 0 : index
      %c0_13 = arith.constant 0 : index
      %16 = vector.load %arg3[%c0_12, %c0_13] : memref<2x4xf32, #tpu.memory_space<vmem>>, vector<2x4xf32>
      %cst_14 = arith.constant dense<0.000000e+00> : vector<2x1xf32>
      %17 = tpu.matmul %16, %15, %cst_14 {dimension_numbers = #tpu.dot_dimension_numbers<[1], [0], [0], [1], [0, 0, 1, 1], [], []>} : vector<2x4xf32>, vector<4x1xf32>, vector<2x1xf32> -> vector<2x1xf32>
      %c0_15 = arith.constant 0 : index
      %c0_16 = arith.constant 0 : index
      %18 = vector.load %arg4[%c0_15, %c0_16] : memref<2x1xf32, #tpu.memory_space<vmem>>, vector<2x1xf32>
      %19 = arith.addf %17, %18 : vector<2x1xf32>
      %cst_17 = arith.constant 0.000000e+00 : f32
      %20 = vector.broadcast %cst_17 : f32 to vector<2x1xf32>
      %21 = arith.maximumf %19, %20 : vector<2x1xf32>
      %c0_18 = arith.constant 0 : index
      %c0_19 = arith.constant 0 : index
      %22 = vector.load %arg5[%c0_18, %c0_19] : memref<4x2xf32, #tpu.memory_space<vmem>>, vector<4x2xf32>
      %cst_20 = arith.constant dense<0.000000e+00> : vector<4x1xf32>
      %23 = tpu.matmul %22, %21, %cst_20 {dimension_numbers = #tpu.dot_dimension_numbers<[1], [0], [0], [1], [0, 0, 1, 1], [], []>} : vector<4x2xf32>, vector<2x1xf32>, vector<4x1xf32> -> vector<4x1xf32>
      %c0_21 = arith.constant 0 : index
      %c0_22 = arith.constant 0 : index
      %24 = vector.load %arg6[%c0_21, %c0_22] : memref<4x1xf32, #tpu.memory_space<vmem>>, vector<4x1xf32>
      %25 = arith.addf %23, %24 : vector<4x1xf32>
      %26 = arith.negf %25 : vector<4x1xf32>
      %27 = math.exp %26 : vector<4x1xf32>
      %cst_23 = arith.constant 1.000000e+00 : f32
      %28 = vector.broadcast %cst_23 : f32 to vector<4x1xf32>
      %29 = arith.addf %28, %27 : vector<4x1xf32>
      %30 = arith.divf %28, %29 : vector<4x1xf32>
      %c0_24 = arith.constant 0 : index
      %c0_25 = arith.constant 0 : index
      %c0_26 = arith.constant 0 : index
      %31 = vector.load %arg7[%c0_24, %c0_25, %c0_26] : memref<1x4x1xf32, #tpu.memory_space<vmem>>, vector<1x4x1xf32>
      %32 = vector.shape_cast %31 : vector<1x4x1xf32> to vector<4x1xf32>
      %33 = vector.shape_cast %30 : vector<4x1xf32> to vector<1x4x1xf32>
      tpu.vector_store %arg7[%c0_24, %c0_25, %c0_26], %33 {strides = array<i32>} : memref<1x4x1xf32, #tpu.memory_space<vmem>>, vector<1x4x1xf32>,
    } else {
    }
    return
  }
  func.func @transform_0(%arg0: i32, %arg1: i32) -> (i32, i32, i32) {
    %c0_i32 = arith.constant 0 : i32
    %c0_i32_0 = arith.constant 0 : i32
    return %arg0, %c0_i32, %arg1 : i32, i32, i32
  }
  func.func @transform_1(%arg0: i32, %arg1: i32) -> (i32, i32) {
    %c0_i32 = arith.constant 0 : i32
    %c0_i32_0 = arith.constant 0 : i32
    %c0_i32_1 = arith.constant 0 : i32
    return %c0_i32, %c0_i32_0 : i32, i32
  }
  func.func @transform_2(%arg0: i32, %arg1: i32) -> (i32, i32) {
    %c0_i32 = arith.constant 0 : i32
    %c0_i32_0 = arith.constant 0 : i32
    %c0_i32_1 = arith.constant 0 : i32
    return %c0_i32, %c0_i32_0 : i32, i32
  }
  func.func @transform_3(%arg0: i32, %arg1: i32) -> (i32, i32) {
    %c0_i32 = arith.constant 0 : i32
    %c0_i32_0 = arith.constant 0 : i32
    %c0_i32_1 = arith.constant 0 : i32
    return %c0_i32, %c0_i32_0 : i32, i32
  }
  func.func @transform_4(%arg0: i32, %arg1: i32) -> (i32, i32) {
    %c0_i32 = arith.constant 0 : i32
    %c0_i32_0 = arith.constant 0 : i32
    %c0_i32_1 = arith.constant 0 : i32
    return %c0_i32, %c0_i32_0 : i32, i32
  }
  func.func @transform_5(%arg0: i32, %arg1: i32) -> (i32, i32, i32) {
    %c0_i32 = arith.constant 0 : i32
    %c0_i32_0 = arith.constant 0 : i32
    %c0_i32_1 = arith.constant 0 : i32
    return %arg0, %c0_i32, %c0_i32_0 : i32, i32, i32
  }
}

</mosaic_0001>

<bundles_post_ra>
// kernel: tpu_custom_call.1
= control target key start
LH: loop header
LB: loop body
LE: loop exit
PB: predicated region body
PF: predicated region fallthrough
CT: control target
= control target key end

     0   :  { %10 = vsyncpa [#allocation4], 0  ;;  %s851_s0 = inlined_call_operand.hbm [shape: f32[2,4,256], index: 0, kind: input, shape index: {}]   ;;  %s852_s1 = inlined_call_operand.vmem [shape: f32[2,4], index: 1, kind: input, shape index: {}]   ;;  %s853_s2 = inlined_call_operand.vmem [shape: f32[2,1], index: 2, kind: input, shape index: {}]   ;;  %s854_s3 = inlined_call_operand.vmem [shape: f32[4,2], index: 3, kind: input, shape index: {}]   ;;  %s855_s4 = inlined_call_operand.vmem [shape: f32[4,1], index: 4, kind: input, shape index: {}]   ;;  %s856_s5 = inlined_call_operand.vmem [shape: f32[2,4,1], index: 5, kind: output, shape index: {}]  }
   0x1   :  { %12 = vsyncpa [#allocation4 + $0x1], 0  ;;  %s733_s18 = smov 0   ;;  %s735_s19 = smov 0  }
   0x2   :  { %s737_s20 = smov 0   ;;  %s739_s21 = smov 0  }
   0x3   :  { %s741_s22 = smov 0   ;;  %s743_s23 = smov 0  }
   0x4 LB: > { %s526_s24 = sadd.s32 4294967295, %s698_s23   ;;  %s30_s25 = sadd.s32 1, %s694_s22  ;;  %s698_s23 = sphi %s743_s23, %s18_s23   ;;  %s694_s22 = sphi %s741_s22, %s864_s22   ;;  %s690_s21 = sphi %s739_s21, %s863_s21   ;;  %s686_s20 = sphi %s737_s20, %s862_s20   ;;  %s682_s19 = sphi %s735_s19, %s861_s19   ;;  %s678_s18 = sphi %s733_s18, %s860_s18  }
   0x5   : > { %p32_p0 = scmp.ge.s32.totalorder %s30_s25, 2  ;;  %s39_s26 = sadd.s32 1, %s686_s20 }
   0x6   : > { %p46_p1 = scmp.ne.s32.totalorder %s686_s20, %s682_s19  ;;  %p47_p2 = scmp.eq.s32.totalorder %s698_s23, 0 }
   0x7   : > { %s866_s25 = smov (%p32_p0, %s30_s25), 0  ;;  %p52_p4 = scmp.ne.s32.totalorder %s682_s19, %s678_s18 }
   0x8   : > { %p769_p3 = por %p47_p2, %p46_p1  ;;  %s34_s28 = ssub.s32 %s694_s22, %s866_s25 }
   0x9   : > { %p53_p5 = scmp.eq.s32.totalorder %s526_s24, 0  ;;  %p37_p6 = scmp.eq.s32.totalorder %s34_s28, 0 }
   0xa   : > { %p564_p8 = scmp.lt.s32.totalorder %s698_s23, 2  ;;  %s198_s6 = sand.u32 1, %s686_s20  }
   0xb   : > { %p776_p7 = por %p53_p5, %p52_p4  ;;  %s543_s7 = sshll.u32 %s694_s22, 7 }
   0xc   : > { %s782_s30 = scalar_select %p37_p6, %s686_s20, %s39_s26  }
   0xd   : > { %s530_s8 = sshll.u32 %s198_s6, 3  ;;  %s210_s11 = scalar_lea.hbm %s851_s0, %s543_s7 }
   0xe   : > { %s202_s12 = scalar_lea.vmem [#allocation3], %s530_s8  ;;  %p791_p9 = pnand %p564_p8, %p769_p3 }
   0xf   : > { %s212_s13 = sshll.u32 %s202_s12, 4  ;;  %p533_p10 = scmp.ge.s32.totalorder %s698_s23, 1  ;;  %s213_s13 = int_to_ptr.vmem [resolvable:$true] %s212_s13 }
  0x10   : > { %p217_p11 = scmp.lt.s32.totalorder %s698_s23, 3  ;;  %s199_s15 = scalar_lea.sflag [#allocation4], %s198_s6 }
  0x11   : > { %p622_p12 = pneg %p791_p9  ;;  %s633_s16 = scalar_lea.vmem %s213_s13, 128 }
  0x12   : > { %p634_p13 = scmp.ne.s32.totalorder %s213_s13, %s633_s16  ;;  %s700_s17 = smov [#allocation3]  }
  0x13   : > { %s638_s18 = sshll.u32 %s700_s17, 4  ;;  %s639_s18 = int_to_ptr.vmem [resolvable:$false] %s638_s18 }
  0x14   : > { %p636_p0 = pnand %p634_p13, %p622_p12  ;;  %s640_s24 = scalar_lea.vmem %s639_s18, 256 }
  0x15   : > { %p641_p2 = scmp.lt.s32.totalorder %s213_s13, %s639_s18  ;;  %p642_p3 = scmp.lt.s32.totalorder %s640_s24, %s633_s16 }
  0x16   : > { %p637_p1 = pneg %p636_p0 }
  0x17   : > { %p643_p4 = por %p642_p3, %p641_p2 }
  0x19   : > { %p644_p5 = pnand %p643_p4, %p637_p1 }
  0x1b   : > { %647 = shalt.err (!%p644_p5)
}
  0x1c   : > { %563 = dma.hbm_to_vmem [thread:$0]  (!%p791_p9), %s210_s11, 128, %s213_s13, %s199_s15  }
  0x1d   : > { %p218_p6 = pnand %p533_p10, %p217_p11 }
  0x1e   : > { %s223_s26 = sand.u32 (!%p218_p6), 1, %s682_s19  }
  0x1f   : > { %221 = sbr.rel (%p218_p6) target bundleno = 620 (0x26c), region = 40  ;;  %s534_s27 = sshll.u32 (!%p218_p6), %s223_s26, 3 }
  0x20   : > { %s224_s28 = scalar_lea.sflag (!%p218_p6), [#allocation4], %s223_s26  ;;  %s227_s6 = scalar_lea.vmem (!%p218_p6), [#allocation3], %s534_s27 }
  0x24   : > { %673 = dma.done.wait (%p776_p7), %s224_s28, 128  }
  0x25   : > { %675 = vsyncadd (%p776_p7), %s224_s28, 4294967168  ;;  %vm262_vm0 = vcmask 3072   ;;  %v701_v0 = vmov 0.0   ;;  %vm269_vm1 = vcmask 1043456   ;;  %v265_v1 = vld [vmem:[%s227_s6] sm:$0xff]  ;;  %vm702_vm2 = vmmov 0  }
  0x26   : > { %263 = vst.msk [vmem:[#allocation2] sm:$0xf] %vm262_vm0, %v701_v0  ;;  %548 = vmatprep.subr.mxu0 %v701_v0  ;;  %553 = vmatprep.subr.mxu1 %v701_v0  ;;  %v267_v2 = vcombine.high %v265_v1, %v265_v1  ;;  %v270_v3 = vsel %vm269_vm1, %v265_v1, 0.0  ;;  %v283_v11 = vld [vmem:[%s852_s1] sm:$0x3]  ;;  %vm285_vm3 = vcmask 31744  }
  0x27   : > { %550 = vmatprep.mubr.msk.f32.mxu0 %vm702_vm2, %v701_v0  ;;  %555 = vmatprep.mubr.msk.f32.mxu1 %vm702_vm2, %v701_v0  ;;  %v284_v12 = vld [vmem:[%s853_s2] sm:$0x3]  ;;  %vm369_vm4 = vcmask 1041408   ;;  %vm365_vm5 = vcmask 15360   ;;  %p254_p7 = scmp.lt.s32.totalorder %s690_s21, 1 }
  0x28   : > { %v271_v4 = vsel %vm269_vm1, %v267_v2, 0.0  ;;  %v363_v17 = vld [vmem:[%s854_s3] sm:$0xf] }
  0x29   : > { %v272_v5 = vadd.f32 %v271_v4, %v270_v3  ;;  %v364_v18 = vld [vmem:[%s855_s4] sm:$0xf]  ;;  %s868_s21 = smov (!%p254_p7, %s690_s21), 1 }
  0x2a   : > { %s535_s14 = sshll.u32 %s868_s21, 2 }
  0x2b   : > { %273 = vadd.xlane.f32.xlu0 %v272_v5  ;;  %s257_s17 = scalar_lea.vmem %s856_s5, %s535_s14 }
  0x2d   : > { %v264_v6 = vld [vmem:[#allocation2] sm:$0xf] }
  0xb4   : > { %v274_v7 = vpop.xlane.xlu0 %273 }
  0xb5   : > { %v275_v8 = vadd.f32 %v274_v7, %v264_v6 }
  0xb7   : > { %277 = vst.msk [vmem:[#allocation2] sm:$0xf] %vm262_vm0, %v275_v8 }
  0xbe   : > { %v281_v9 = vld [vmem:[#allocation2] sm:$0xf] }
  0xbf   : > { %v282_v10 = vmul.f32 0.00390625, %v281_v9 }
  0xc1   : > { %549 = vmatpush3.msk.msra.mxu0 %vm269_vm1, %v282_v10 }
  0xc2   : > { %551 = vmatmul.mubr.msk.f32.vlgmr.msra.gmra.mxu0 %vm285_vm3, %v283_v11 }
 0x182   : > { %v358_v13 = vpop.f32.mrf.mxu0 }
 0x183   : > { %v359_v14 = vadd.f32 %v358_v13, %v284_v12 }
 0x184   : > { %v552_v15 = vpop.f32.mrf.mxu0 }
 0x185   : > { %v362_v16 = vmax.f32 %v359_v14, 0.0 }
 0x187   : > { %554 = vmatpush3.msk.msra.mxu1 %vm369_vm4, %v362_v16 }
 0x188   : > { %556 = vmatmul.mubr.msk.f32.vlgmr.msra.gmra.mxu1 %vm365_vm5, %v363_v17 }
 0x248   : > { %v439_v19 = vpop.f32.mrf.mxu1 }
 0x249   : > { %v440_v20 = vadd.f32 %v439_v19, %v364_v18 }
 0x24a   : > { %v557_v21 = vpop.f32.mrf.mxu1 }
 0x24b   : > { %v540_v22 = vmul.f32 -1.442695, %v440_v20 }
 0x24d   : > { %616 = vpow2.f32 %v540_v22 }
 0x25a   : > { %v617_v23 = vpop.eup %616 }
 0x25b   : > { %v446_v24 = vadd.f32 1.0, %v617_v23 }
 0x25d   : > { %618 = vrcp.f32 %v446_v24 }
 0x26a   : > { %v619_v25 = vpop.eup %618 }
 0x26b   : > { %449 = vst.msk [vmem:[%s257_s17] sm:$0xf] %vm262_vm0, %v619_v25 }
 0x26c PF: > { %s18_s23 = sadd.s32 1, %s698_s23   ;;  %s860_s18 = smov %s682_s19 }
 0x26d   : > { %p15_p8 = scmp.ge.s32.totalorder %s18_s23, 4   ;;  %s861_s19 = smov %s686_s20 }
 0x26e   : > { %s862_s20 = smov %s782_s30  ;;  %s863_s21 = smov %s694_s22 }
 0x26f   : > { %s864_s22 = smov %s866_s25  ;;  %17 = sbr.rel (!%p15_p8) target bundleno = 4 (0x4), region = 88 }
 0x274   :  { %469 = vsyncpa [#allocation4], 1 }
 0x275   :  { %471 = vsyncpa [#allocation4 + $0x1], 1 }

</bundles_post_ra>
